<compile_context>
chip_gen: v5e
topology: v5e:2x2
jax: 0.10.0
libtpu: 0.0.40
codegen_flags: <defaults>
</compile_context>

<pallas_src>
import jax
import jax.numpy as jnp
from jax import lax
from jax.experimental import pallas as pl
from jax.experimental.pallas import tpu as pltpu


def add_norm_kernel(x_ref, t_ref, o_ref):
    # x_ref: (tb, D) tile of rows; t_ref: (1, D) learned tensor (broadcast).
    x = x_ref[...].astype(jnp.float32)
    t = t_ref[...].astype(jnp.float32)
    y = x + t                                             # add learned tensor
    mean = jnp.mean(y, axis=-1, keepdims=True)            # LN over feature dim
    centered = y - mean
    var = jnp.mean(centered * centered, axis=-1, keepdims=True)
    inv = lax.rsqrt(var + 1e-5)
    o_ref[...] = (centered * inv).astype(o_ref.dtype)


def _sublane_pack(dtype):
    # Rows per sublane group: f32 -> 8, bf16/f16 -> 16, int8/fp8 -> 32.
    itemsize = jnp.dtype(dtype).itemsize
    if itemsize >= 4:
        return 8
    if itemsize == 2:
        return 16
    return 32


def _chip_info():
    """Best-effort (vmem_capacity_bytes, num_tensorcores) for the local chip."""
    vmem_cap = 128 * 1024 * 1024   # v5e/v6e default
    num_tc = 1
    try:
        info = pltpu.get_tpu_info()
        v = getattr(info, "vmem_capacity_bytes", None)
        if v:
            vmem_cap = int(v)
    except Exception:
        pass
    try:
        kind = jax.devices()[0].device_kind.lower()
        if "v7" in kind:
            num_tc = 2
    except Exception:
        pass
    # 64 MiB per-TC VMEM is the v7x signature (2 TCs/chip).
    if vmem_cap <= 64 * 1024 * 1024:
        num_tc = max(num_tc, 2)
    return vmem_cap, num_tc


def _step_vmem_bytes(tb, D, itemsize, buffers=2):
    # buffers x (in tile + out tile) of the IO dtype, plus f32 temporaries.
    # For f32 input the astype is a no-op and Mosaic keeps the elementwise
    # chain mostly in vregs, so count only ~1 tile of f32 slack; narrow dtypes
    # need the upcast copies.
    io = 2 * buffers * tb * D * itemsize
    tmp = (2 * tb * D * 4) if itemsize < 4 else (tb * D * 4)
    return io + tmp


def _choose_tb(B, D, dtype):
    itemsize = jnp.dtype(dtype).itemsize
    pack = _sublane_pack(dtype)
    vmem_cap, num_tc = _chip_info()

    if vmem_cap <= 64 * 1024 * 1024:           # v7x: 64 MiB physical per TC
        target_in_bytes = 2 * 1024 * 1024
        vmem_budget = 16 * 1024 * 1024
    else:                                       # v5e / v6e: 128 MiB VMEM
        target_in_bytes = 6 * 1024 * 1024
        vmem_budget = 48 * 1024 * 1024

    row_bytes = max(1, D * itemsize)
    tb = max(pack, (target_in_bytes // row_bytes) // pack * pack)
    while tb > pack and _step_vmem_bytes(tb, D, itemsize) > vmem_budget:
        tb -= pack

    b_rounded = -(-B // pack) * pack
    tb = min(tb, b_rounded)

    # On 2-TC chips (v7x) make the parallel grid axis an even number of steps
    # so both TensorCores stay busy; on 1-TC chips the grid is a serial loop
    # and splitting a batch that fits one tile is pure overhead.
    if num_tc >= 2 and b_rounded > pack:
        n_steps = -(-b_rounded // tb)
        if n_steps % 2 == 1:
            n_steps += 1
            rows_per_step = -(-b_rounded // n_steps)
            tb = max(pack, -(-rows_per_step // pack) * pack)
    return tb


def add_and_normalize(x, learned_tensor, *, tb=None, input_buffer_count=2):
    B, D = x.shape
    itemsize = jnp.dtype(x.dtype).itemsize
    pack = _sublane_pack(x.dtype)
    if tb is None:
        tb = _choose_tb(B, D, x.dtype)
    tb = max(pack, (tb // pack) * pack)

    # No wrapper-side padding: grid=cdiv and Pallas edge blocks handle a ragged
    # batch (OOB tail-row writes are masked; LN is per-row so junk rows never
    # contaminate real rows).
    n_steps = pl.cdiv(B, tb)

    # NOTE: keep D a multiple of 128 at model-setup time for lane-dense stores;
    # other D still works here but pays masked partial-store cost.
    t2d = learned_tensor.reshape(1, D)

    # VMEM limit: follow the real per-step requirement (with ~25% slack),
    # capped under the chip's physical VMEM.
    vmem_cap, _ = _chip_info()
    need = _step_vmem_bytes(tb, D, itemsize, buffers=max(2, input_buffer_count))
    vmem_limit = int(min(max(vmem_cap - 4 * 1024 * 1024, 16 * 1024 * 1024),
                         max(16 * 1024 * 1024, need + need // 4)))
    # TODO(synk): for D so large that even a single pack-row tile exceeds VMEM,
    # add a feature-dim grid axis with streaming mean/var accumulators.

    if input_buffer_count > 2:
        # Optional deeper input pipelining (v7x DMA-latency sweep).
        x_spec = pl.BlockSpec((tb, D), lambda i: (i, 0),
                              pipeline_mode=pl.Buffered(input_buffer_count))
    else:
        x_spec = pl.BlockSpec((tb, D), lambda i: (i, 0))

    return pl.pallas_call(
        add_norm_kernel,
        out_shape=jax.ShapeDtypeStruct((B, D), x.dtype),
        grid_spec=pltpu.PrefetchScalarGridSpec(
            num_scalar_prefetch=0,
            grid=(n_steps,),
            in_specs=[
                x_spec,                                    # x rows tile
                pl.BlockSpec((1, D), lambda i: (0, 0)),    # learned tensor (resident)
            ],
            out_specs=pl.BlockSpec((tb, D), lambda i: (i, 0)),
        ),
        compiler_params=pltpu.CompilerParams(
            dimension_semantics=("parallel",),
            vmem_limit_bytes=vmem_limit,
        ),
    )(x, t2d)


def reference(x, learned_tensor):
    y = x.astype(jnp.float32) + learned_tensor.astype(jnp.float32)
    mean = jnp.mean(y, axis=-1, keepdims=True)
    var = jnp.mean((y - mean) ** 2, axis=-1, keepdims=True)
    return ((y - mean) * lax.rsqrt(var + 1e-5)).astype(x.dtype)


if __name__ == "__main__":
    key = jax.random.PRNGKey(0)
    kx, kt, kx2 = jax.random.split(key, 3)

    # Small shapes consistent with the module: batch=8, input_size=128.
    B, D = 8, 128
    x = jax.random.normal(kx, (B, D), dtype=jnp.float32)
    learned_tensor = jax.random.normal(kt, (D,), dtype=jnp.float32)  # torch.randn equivalent

    out = jax.block_until_ready(add_and_normalize(x, learned_tensor))
    ref = reference(x, learned_tensor)
    assert out.shape == (B, D)
    assert jnp.allclose(out, ref, atol=1e-5, rtol=1e-5), "mismatch vs reference"

    # Ragged batch: exercises the no-pad edge-block path (auto tile size).
    B2 = 20
    x2 = jax.random.normal(kx2, (B2, D), dtype=jnp.float32)
    out2 = jax.block_until_ready(add_and_normalize(x2, learned_tensor))
    ref2 = reference(x2, learned_tensor)
    assert out2.shape == (B2, D)
    assert jnp.allclose(out2, ref2, atol=1e-5, rtol=1e-5), "mismatch (ragged, auto tb)"

    # Ragged batch with a forced small tile -> multiple steps + masked tail block.
    out3 = jax.block_until_ready(add_and_normalize(x2, learned_tensor, tb=8))
    assert jnp.allclose(out3, ref2, atol=1e-5, rtol=1e-5), "mismatch (ragged, tb=8)"

    # bf16 path: exercises the dtype-aware sublane pack (16) and upcast math.
    xb = x2.astype(jnp.bfloat16)
    tb16 = learned_tensor.astype(jnp.bfloat16)
    outb = jax.block_until_ready(add_and_normalize(xb, tb16))
    refb = reference(xb, tb16)
    assert outb.shape == (B2, D)
    assert jnp.allclose(outb.astype(jnp.float32), refb.astype(jnp.float32),
                        atol=3e-2, rtol=3e-2), "mismatch (bf16)"

    print("KERNEL_OK")
</pallas_src>

<mosaic_0001>
module attributes {stable_mosaic.version = 11 : i64} {
  func.func @add_norm_kernel(%arg0: i32, %arg1: memref<8x128xf32, #tpu.memory_space<vmem>>, %arg2: memref<1x128xf32, #tpu.memory_space<vmem>>, %arg3: memref<8x128xf32, #tpu.memory_space<vmem>>) attributes {dimension_semantics = [#tpu.dimension_semantics<parallel>], iteration_bounds = array<i64: 1>, scalar_prefetch = 0 : i64, scratch_operands = 0 : i64, tpu.core_type = #tpu.core_type<tc>, window_params = [{transform_indices = @transform_0, window_bounds = array<i64: 8, 128>}, {pipeline_mode = #tpu.pipeline_mode<synchronous>, transform_indices = @transform_1, window_bounds = array<i64: 1, 128>}, {transform_indices = @transform_2, window_bounds = array<i64: 8, 128>}]} {
    %c0 = arith.constant 0 : index
    %c0_0 = arith.constant 0 : index
    %0 = vector.load %arg1[%c0, %c0_0] : memref<8x128xf32, #tpu.memory_space<vmem>>, vector<8x128xf32>
    %c0_1 = arith.constant 0 : index
    %c0_2 = arith.constant 0 : index
    %1 = vector.load %arg2[%c0_1, %c0_2] : memref<1x128xf32, #tpu.memory_space<vmem>>, vector<1x128xf32>
    %2 = vector.broadcast %1 : vector<1x128xf32> to vector<8x128xf32>
    %3 = arith.addf %0, %2 : vector<8x128xf32>
    %cst = arith.constant dense<0.000000e+00> : vector<8xf32>
    %4 = vector.multi_reduction <add>, %3, %cst [1] : vector<8x128xf32> to vector<8xf32>
    %5 = vector.shape_cast %4 : vector<8xf32> to vector<8x1xf32>
    %cst_3 = arith.constant 1.280000e+02 : f32
    %6 = vector.broadcast %cst_3 : f32 to vector<8x1xf32>
    %7 = arith.divf %5, %6 : vector<8x1xf32>
    %8 = vector.broadcast %7 : vector<8x1xf32> to vector<8x128xf32>
    %9 = arith.subf %3, %8 : vector<8x128xf32>
    %10 = arith.mulf %9, %9 : vector<8x128xf32>
    %cst_4 = arith.constant dense<0.000000e+00> : vector<8xf32>
    %11 = vector.multi_reduction <add>, %10, %cst_4 [1] : vector<8x128xf32> to vector<8xf32>
    %12 = vector.shape_cast %11 : vector<8xf32> to vector<8x1xf32>
    %cst_5 = arith.constant 1.280000e+02 : f32
    %13 = vector.broadcast %cst_5 : f32 to vector<8x1xf32>
    %14 = arith.divf %12, %13 : vector<8x1xf32>
    %cst_6 = arith.constant 9.99999974E-6 : f32
    %15 = vector.broadcast %cst_6 : f32 to vector<8x1xf32>
    %16 = arith.addf %14, %15 : vector<8x1xf32>
    %17 = math.rsqrt %16 : vector<8x1xf32>
    %18 = vector.broadcast %17 : vector<8x1xf32> to vector<8x128xf32>
    %19 = arith.mulf %9, %18 : vector<8x128xf32>
    %c0_7 = arith.constant 0 : index
    %c0_8 = arith.constant 0 : index
    %20 = vector.load %arg3[%c0_7, %c0_8] : memref<8x128xf32, #tpu.memory_space<vmem>>, vector<8x128xf32>
    tpu.vector_store %arg3[%c0_7, %c0_8], %19 {strides = array<i32>} : memref<8x128xf32, #tpu.memory_space<vmem>>, vector<8x128xf32>,
    return
  }
  func.func @transform_0(%arg0: i32) -> (i32, i32) {
    %c0_i32 = arith.constant 0 : i32
    %c0_i32_0 = arith.constant 0 : i32
    return %arg0, %c0_i32 : i32, i32
  }
  func.func @transform_1(%arg0: i32) -> (i32, i32) {
    %c0_i32 = arith.constant 0 : i32
    %c0_i32_0 = arith.constant 0 : i32
    %c0_i32_1 = arith.constant 0 : i32
    return %c0_i32, %c0_i32_0 : i32, i32
  }
  func.func @transform_2(%arg0: i32) -> (i32, i32) {
    %c0_i32 = arith.constant 0 : i32
    %c0_i32_0 = arith.constant 0 : i32
    return %arg0, %c0_i32 : i32, i32
  }
}

</mosaic_0001>

<bundles_post_ra>
// kernel: tpu_custom_call.1
= control target key start
LH: loop header
LB: loop body
LE: loop exit
PB: predicated region body
PF: predicated region fallthrough
CT: control target
= control target key end

     0   :  { %7 = vsyncpa [#allocation3], 0  ;;  %s207_s0 = inlined_call_operand.hbm [shape: f32[8,128], index: 0, kind: input, shape index: {}]   ;;  %s208_s1 = inlined_call_operand.hbm [shape: f32[1,128], index: 1, kind: input, shape index: {}]   ;;  %s209_s2 = inlined_call_operand.hbm [shape: f32[8,128], index: 2, kind: output, shape index: {}]  }
   0x1   :  { %8 = vsyncpa [#allocation6], 0 }
   0x2   :  { %9 = vsyncpa [#allocation4], 0  ;;  %s15_s11 = sshll.u32 %s207_s0, 4  ;;  %s179_s12 = smov [#allocation2]   ;;  %s16_s11 = int_to_ptr.hbm [resolvable:$true] %s15_s11 }
   0x3   :  { %s17_s13 = sshll.u32 %s179_s12, 4  ;;  %s26_s16 = sshll.u32 %s208_s1, 4  ;;  %s18_s13 = int_to_ptr.vmem [resolvable:$true] %s17_s13  ;;  %s27_s16 = int_to_ptr.hbm [resolvable:$true] %s26_s16 }
   0x4   :  { %20 = dma.hbm_to_vmem [thread:$0]  %s16_s11, 128, %s18_s13, [#allocation3]  }
   0x5   :  { %s180_s17 = smov [#allocation5]  }
   0x6   :  { %s28_s18 = sshll.u32 %s180_s17, 4  ;;  %s29_s18 = int_to_ptr.vmem [resolvable:$true] %s28_s18 }
   0x7   :  { %31 = dma.hbm_to_vmem [thread:$0]  %s27_s16, 16, %s29_s18, [#allocation6]  }
   0x8   :  { %173 = dma.done.wait [#allocation3], 128  }
   0x9   :  { %174 = vsyncadd [#allocation3], 4294967168 }
   0xa   :  { %175 = dma.done.wait [#allocation6], 16  }
   0xb   :  { %176 = vsyncadd [#allocation6], 4294967280  ;;  %v40_v0 = vld [vmem:[#allocation2] sm:$0xff]  ;;  %v96_v1 = vld [vmem:[#allocation5] ss:$0 sm:$0xff]  ;;  %v181_v3 = vmov 128.0  }
   0xc   :  { %v45_v2 = vadd.f32 %v96_v1, %v40_v0  ;;  %97 = vrcp.f32 %v181_v3  ;;  %s182_s0 = smov [#allocation7]   ;;  %s81_s21 = sshll.u32 %s209_s2, 4  ;;  %s82_s21 = int_to_ptr.hbm [resolvable:$true] %s81_s21 }
   0xd   :  { %s79_s1 = sshll.u32 %s182_s0, 4  ;;  %s80_s1 = int_to_ptr.vmem [resolvable:$true] %s79_s1 }
   0xe   :  { %46 = vadd.xlane.f32.xlu0 %v45_v2 }
  0x12   :  { %v98_v4 = vpop.eup %97 }
  0x13   :  { %v49_v5 = vmul.f32 128.0, %v98_v4  ;;  %vm53_vm0 = vweird.f32 %v98_v4 }
  0x15   :  { %v50_v6 = vsub.f32 1.0, %v49_v5 }
  0x17   :  { %v51_v7 = vmul.f32 %v98_v4, %v50_v6 }
  0x19   :  { %v52_v8 = vadd.f32 %v98_v4, %v51_v7 }
  0x1b   :  { %v54_v9 = vsel %vm53_vm0, %v98_v4, %v52_v8 }
  0x81   :  { %v47_v10 = vpop.xlane.xlu0 %46 }
  0x82   :  { %v55_v11 = vmul.f32 %v54_v9, %v47_v10 }
  0x84   :  { %v56_v12 = vsub.f32 %v45_v2, %v55_v11 }
  0x86   :  { %v57_v13 = vmul.f32 %v56_v12, %v56_v12 }
  0x88   :  { %58 = vadd.xlane.f32.xlu0 %v57_v13 }
  0xfb   :  { %v59_v14 = vpop.xlane.xlu0 %58 }
  0xfc   :  { %v60_v15 = vmul.f32 %v59_v14, %v54_v9 }
  0xfe   :  { %v61_v16 = vadd.f32 1e-05, %v60_v15 }
 0x100   :  { %99 = vrsqrt.f32 %v61_v16  ;;  %vm68_vm2 = vweird.f32 %v61_v16 }
 0x106   :  { %v100_v17 = vpop.eup %99 }
 0x107   :  { %v63_v18 = vmul.f32 %v100_v17, %v61_v16  ;;  %vm69_vm1 = vweird.f32 %v100_v17 }
 0x108   :  { %vm70_vm3 = vmor %vm68_vm2, %vm69_vm1 }
 0x109   :  { %v64_v19 = vmul.f32 %v100_v17, %v63_v18 }
 0x10b   :  { %v65_v20 = vmul.f32 0.5, %v64_v19 }
 0x10d   :  { %v66_v21 = vsub.f32 1.5, %v65_v20 }
 0x10f   :  { %v67_v22 = vmul.f32 %v100_v17, %v66_v21 }
 0x111   :  { %v71_v23 = vsel %vm70_vm3, %v100_v17, %v67_v22 }
 0x112   :  { %v72_v24 = vmul.f32 %v71_v23, %v56_v12 }
 0x114   :  { %73 = vst [vmem:[#allocation7] sm:$0xff] %v72_v24 }
 0x115   :  { %84 = dma.vmem_to_hbm [thread:$0]  %s80_s1, 128, %s82_s21, [#allocation4]  }
 0x116   :  { %177 = dma.done.wait [#allocation4], 128  }
 0x117   :  { %178 = vsyncadd [#allocation4], 4294967168 }
 0x118   :  { %89 = vsyncpa [#allocation3], 1 }
 0x119   :  { %90 = vsyncpa [#allocation6], 1 }
 0x11a   :  { %91 = vsyncpa [#allocation4], 1 }

</bundles_post_ra>
